<compile_context>
chip_gen: v6e
topology: v6e:2x2x1
jax: 0.10.0
libtpu: 0.0.40
codegen_flags: <defaults>
</compile_context>

<pallas_src>
import functools

import jax
import jax.numpy as jnp
from jax import lax
from jax.experimental import pallas as pl
from jax.experimental.pallas import tpu as pltpu

BN_EPS = 1e-5


def _round_up(n, m):
    return ((n + m - 1) // m) * m


def _chip_defaults():
    """Per-generation (tile_l, vmem_limit_bytes). Conservative fallback if query fails."""
    try:
        vmem_cap = int(pltpu.get_tpu_info().vmem_capacity_bytes)
    except Exception:
        vmem_cap = 64 * 1024 * 1024
    if vmem_cap >= (100 << 20):          # v5e / v6e: 128 MiB VMEM
        return 512, 96 * 1024 * 1024
    return 256, 48 * 1024 * 1024         # v7x: 64 MiB VMEM


def _choose_pass2_tile(tile_l, num_l, d, h_itemsize, budget_bytes=8 * 1024 * 1024):
    """Merge pass-2 row tiles (multiples of tile_l dividing l_out_p) up to a VMEM budget."""
    best = 1
    for g in range(1, num_l + 1):
        if num_l % g:
            continue
        rows = tile_l * g
        if 2 * rows * d * (h_itemsize + 4) <= budget_bytes:   # double-buffered in + out
            best = g
    return tile_l * best


def _pass1_kernel(x_ref, *refs, k_size, tile_l, l_out, fused):
    """Conv (K shifted MXU dots) + bias + GLU; per-batch BN sum / sumsq accumulation.

    x_ref : (1, L_pad, D)  per-batch zero-padded input, resident across seq tiles
    fused : w_ref (K, D, 2D), b_ref (1, 2D)
    split : wa/wg (K, D, D), ba/bg (1, D)
    h_ref : (1, tile_l, D)  GLU output tile (bf16 by default)
    sum_ref / ssq_ref : (1, 1, D) f32 per-batch accumulators, resident across seq tiles
    """
    l = pl.program_id(1)
    num_l = pl.num_programs(1)

    if fused:
        w_ref, b_ref, h_ref, sum_ref, ssq_ref = refs
        d = b_ref.shape[-1] // 2
    else:
        wa_ref, wg_ref, ba_ref, bg_ref, h_ref, sum_ref, ssq_ref = refs
        d = ba_ref.shape[-1]

    @pl.when(l == 0)
    def _init():
        sum_ref[...] = jnp.zeros_like(sum_ref)
        ssq_ref[...] = jnp.zeros_like(ssq_ref)

    start = pl.multiple_of(l * tile_l, tile_l)

    if fused:
        # Single (D, 2D) dot per tap; value half in lanes [:D], gate half in [D:].
        acc = jnp.broadcast_to(b_ref[...], (tile_l, 2 * d)).astype(jnp.float32)
        for j in range(k_size):                                   # static, unrolled
            xj = x_ref[0, pl.ds(start + j, tile_l), :]            # (tile_l, D)
            acc = acc + jnp.dot(xj, w_ref[j], preferred_element_type=jnp.float32)
        acc_a = acc[:, :d]
        acc_g = acc[:, d:]
    else:
        acc_a = jnp.broadcast_to(ba_ref[...], (tile_l, d)).astype(jnp.float32)
        acc_g = jnp.broadcast_to(bg_ref[...], (tile_l, d)).astype(jnp.float32)
        for j in range(k_size):
            xj = x_ref[0, pl.ds(start + j, tile_l), :]
            acc_a = acc_a + jnp.dot(xj, wa_ref[j], preferred_element_type=jnp.float32)
            acc_g = acc_g + jnp.dot(xj, wg_ref[j], preferred_element_type=jnp.float32)

    h = acc_a * jax.nn.sigmoid(acc_g)                             # GLU in f32
    h_ref[0] = h.astype(h_ref.dtype)                              # bf16 store by default

    # BatchNorm statistics (per-batch partials, f32). Only the last seq tile can
    # contain pad rows, so the mask work is gated to that tile.
    rem = l_out % tile_l
    if rem != 0:
        @pl.when(l == num_l - 1)
        def _last_tile():
            row = lax.broadcasted_iota(jnp.int32, (tile_l, 1), 0)
            hm = jnp.where(row < rem, h, 0.0)
            sum_ref[0] += jnp.sum(hm, axis=0, keepdims=True)
            ssq_ref[0] += jnp.sum(hm * hm, axis=0, keepdims=True)

        @pl.when(l != num_l - 1)
        def _full_tile():
            sum_ref[0] += jnp.sum(h, axis=0, keepdims=True)
            ssq_ref[0] += jnp.sum(h * h, axis=0, keepdims=True)
    else:
        sum_ref[0] += jnp.sum(h, axis=0, keepdims=True)
        ssq_ref[0] += jnp.sum(h * h, axis=0, keepdims=True)


def _pass2_kernel(h_ref, scale_ref, shift_ref, o_ref):
    """y = max(h * scale + shift, 0)  — memory-bound, fully parallel grid."""
    h = h_ref[0].astype(jnp.float32)                              # (tile2, D)
    y = h * scale_ref[...] + shift_ref[...]
    o_ref[0] = jnp.maximum(y, 0.0).astype(o_ref.dtype)


def convlayer_forward(x, conv_w, conv_b, bn_gamma, bn_beta, *,
                      decode=False, tile_l=None, mxu_dtype=jnp.bfloat16,
                      h_dtype=None, vmem_limit_bytes=None):
    """Forward pass of Convlayer.

    x:        (B, L, D)   float32 (channels-last; the PyTorch module transposes internally)
    conv_w:   (2D, D, K)  Conv1d weight (out_ch, in_ch, k)
    conv_b:   (2D,)       Conv1d bias
    bn_gamma: (D,), bn_beta: (D,)  BatchNorm1d affine params (training-mode batch stats)
    returns   (B, L_out, D) float32, L_out = L (encoder, odd K) or L - K + 1 (decode).
    """
    B, L, D = x.shape
    two_d, d_in, K = conv_w.shape
    assert d_in == D and two_d == 2 * D

    if h_dtype is None:
        h_dtype = mxu_dtype

    pad = 0 if decode else (K - 1) // 2
    l_out = L - K + 1 + 2 * pad
    assert l_out >= 1

    default_tile, default_vmem = _chip_defaults()
    if tile_l is None:
        tile_l = default_tile
    if vmem_limit_bytes is None:
        vmem_limit_bytes = default_vmem

    tile_l = _round_up(max(int(tile_l), 8), 8)
    tile_l = min(tile_l, _round_up(l_out, 8))
    l_out_p = _round_up(l_out, tile_l)
    num_l = l_out_p // tile_l
    l_pad = l_out_p + K - 1          # per-batch padded seq length seen by pass 1

    # Per-batch zero padding: conv left/right pad + pad up to the tile-rounded length.
    # Halos are read from this per-batch buffer, so they never mix adjacent sequences.
    x_pad = jnp.pad(x, ((0, 0), (pad, pad + (l_out_p - l_out)), (0, 0)))
    x_pad = x_pad.astype(mxu_dtype)

    w_f32 = conv_w.astype(jnp.float32)
    fused = (D % 128 == 0)           # lane-aligned GLU slices -> single (D, 2D) dot per tap

    const2 = lambda b, l: (0, 0)
    const3 = lambda b, l: (0, 0, 0)
    x_itemsize = int(jnp.dtype(mxu_dtype).itemsize)
    h_itemsize = int(jnp.dtype(h_dtype).itemsize)

    if fused:
        w_all = jnp.transpose(w_f32, (2, 1, 0)).astype(mxu_dtype)      # (K, D, 2D)
        b_all = conv_b.reshape(1, 2 * D).astype(jnp.float32)
        conv_inputs = (w_all, b_all)
        conv_specs = [pl.BlockSpec((K, D, 2 * D), const3),             # resident weights
                      pl.BlockSpec((1, 2 * D), const2)]                # resident bias
    else:
        wa = jnp.transpose(w_f32[:D], (2, 1, 0)).astype(mxu_dtype)     # (K, D, D) value
        wg = jnp.transpose(w_f32[D:], (2, 1, 0)).astype(mxu_dtype)     # (K, D, D) gate
        ba = conv_b[:D].reshape(1, D).astype(jnp.float32)
        bg = conv_b[D:].reshape(1, D).astype(jnp.float32)
        conv_inputs = (wa, wg, ba, bg)
        conv_specs = [pl.BlockSpec((K, D, D), const3),
                      pl.BlockSpec((K, D, D), const3),
                      pl.BlockSpec((1, D), const2),
                      pl.BlockSpec((1, D), const2)]

    # ---------------- pass 1: conv + GLU + per-batch BN-stat accumulation -----------
    kernel1 = functools.partial(_pass1_kernel, k_size=K, tile_l=tile_l,
                                l_out=l_out, fused=fused)
    h, psum, pssq = pl.pallas_call(
        kernel1,
        out_shape=(
            jax.ShapeDtypeStruct((B, l_out_p, D), h_dtype),
            jax.ShapeDtypeStruct((B, 1, D), jnp.float32),
            jax.ShapeDtypeStruct((B, 1, D), jnp.float32),
        ),
        grid_spec=pltpu.PrefetchScalarGridSpec(
            num_scalar_prefetch=0,
            grid=(B, num_l),
            in_specs=[pl.BlockSpec((1, l_pad, D), lambda b, l: (b, 0, 0))] + conv_specs,
            out_specs=(
                pl.BlockSpec((1, tile_l, D), lambda b, l: (b, l, 0)),   # h tile
                pl.BlockSpec((1, 1, D), lambda b, l: (b, 0, 0)),        # per-batch sum
                pl.BlockSpec((1, 1, D), lambda b, l: (b, 0, 0)),        # per-batch sumsq
            ),
        ),
        compiler_params=pltpu.CompilerParams(
            dimension_semantics=("parallel", "arbitrary"),
            vmem_limit_bytes=int(vmem_limit_bytes),
        ),
        cost_estimate=pl.CostEstimate(
            flops=int(4 * B * l_out_p * D * D * K + 4 * B * l_out_p * D),
            transcendentals=int(B * l_out_p * D),
            bytes_accessed=int(B * l_pad * D * x_itemsize
                               + 2 * K * D * D * x_itemsize
                               + B * l_out_p * D * h_itemsize),
        ),
    )(x_pad, *conv_inputs)

    # Glue: batch-reduce the partials and fold BN into per-channel scale / shift.
    count = jnp.float32(B * l_out)
    mean = jnp.sum(psum, axis=0) / count                         # (1, D)
    e2 = jnp.sum(pssq, axis=0) / count
    var = jnp.maximum(e2 - mean * mean, 0.0)                     # biased variance
    rstd = lax.rsqrt(var + BN_EPS)
    scale = bn_gamma.reshape(1, D).astype(jnp.float32) * rstd
    shift = bn_beta.reshape(1, D).astype(jnp.float32) - mean * scale

    # ---------------- pass 2: fused normalize + affine + ReLU -----------------------
    tile2 = _choose_pass2_tile(tile_l, num_l, D, h_itemsize)
    num_l2 = l_out_p // tile2

    out = pl.pallas_call(
        _pass2_kernel,
        out_shape=jax.ShapeDtypeStruct((B, l_out, D), jnp.float32),
        grid_spec=pltpu.PrefetchScalarGridSpec(
            num_scalar_prefetch=0,
            grid=(B, num_l2),
            in_specs=[
                pl.BlockSpec((1, tile2, D), lambda b, l: (b, l, 0)),
                pl.BlockSpec((1, D), const2),                          # scale (resident)
                pl.BlockSpec((1, D), const2),                          # shift (resident)
            ],
            # Last block may extend past l_out; the edge write is clipped by Pallas,
            # so no separate out[:, :l_out, :] slice copy is needed.
            out_specs=pl.BlockSpec((1, tile2, D), lambda b, l: (b, l, 0)),
        ),
        compiler_params=pltpu.CompilerParams(
            dimension_semantics=("parallel", "parallel"),
            vmem_limit_bytes=int(vmem_limit_bytes),
        ),
        cost_estimate=pl.CostEstimate(
            flops=int(3 * B * l_out_p * D),
            transcendentals=0,
            bytes_accessed=int(B * l_out_p * D * h_itemsize + B * l_out * D * 4),
        ),
    )(h, scale, shift)

    return out


def _reference_forward(x, conv_w, conv_b, bn_gamma, bn_beta, *, decode=False):
    """Pure-JAX reference mirroring the PyTorch forward (training-mode BN)."""
    B, L, D = x.shape
    K = conv_w.shape[-1]
    pad = 0 if decode else (K - 1) // 2
    xt = jnp.transpose(x, (0, 2, 1))                            # (B, D, L)  NCL
    y = lax.conv_general_dilated(
        xt, conv_w, window_strides=(1,), padding=[(pad, pad)],
        dimension_numbers=("NCH", "OIH", "NCH"))
    y = y + conv_b[None, :, None]
    a, g = y[:, :D, :], y[:, D:, :]
    h = a * jax.nn.sigmoid(g)
    mean = h.mean(axis=(0, 2), keepdims=True)
    var = ((h - mean) ** 2).mean(axis=(0, 2), keepdims=True)
    hn = (h - mean) / jnp.sqrt(var + BN_EPS)
    hn = hn * bn_gamma[None, :, None] + bn_beta[None, :, None]
    return jnp.maximum(hn, 0.0).transpose(0, 2, 1)


if __name__ == "__main__":
    def make_inputs(key, B, L, D, K):
        k1, k2, k3, k4, k5 = jax.random.split(key, 5)
        x = jax.random.normal(k1, (B, L, D), dtype=jnp.float32)
        bound = (1.0 / (D * K)) ** 0.5
        conv_w = jax.random.uniform(k2, (2 * D, D, K), jnp.float32, -bound, bound)
        conv_b = jax.random.uniform(k3, (2 * D,), jnp.float32, -bound, bound)
        bn_gamma = 1.0 + 0.1 * jax.random.normal(k4, (D,), jnp.float32)
        bn_beta = 0.1 * jax.random.normal(k5, (D,), jnp.float32)
        return x, conv_w, conv_b, bn_gamma, bn_beta

    # 1) encoder, split-weight path (D not 128-aligned), strict f32 check.
    #    tile_l=8 -> multi-tile grid + resident per-batch BN accumulators exercised.
    B, L, D, K = 2, 16, 8, 3
    args = make_inputs(jax.random.PRNGKey(0), B, L, D, K)
    out = jax.block_until_ready(
        convlayer_forward(*args, decode=False, tile_l=8, mxu_dtype=jnp.float32))
    ref = _reference_forward(*args, decode=False)
    assert out.shape == (B, L, D)
    assert jnp.allclose(out, ref, atol=1e-4, rtol=1e-4), "encode f32 mismatch"

    # 2) decoder path (L_out = L - K + 1): exercises the gated partial-tile BN mask
    #    and the clipped final output block (no trailing slice copy).
    out_dec = jax.block_until_ready(
        convlayer_forward(*args, decode=True, tile_l=8, mxu_dtype=jnp.float32))
    ref_dec = _reference_forward(*args, decode=True)
    assert out_dec.shape == (B, L - K + 1, D)
    assert jnp.allclose(out_dec, ref_dec, atol=1e-4, rtol=1e-4), "decode f32 mismatch"

    # 3) lane-aligned D=128: exercises the fused (D, 2D) per-tap matmul path and the
    #    per-chip default tile derivation.
    args128 = make_inputs(jax.random.PRNGKey(1), 2, 16, 128, 3)
    out128 = jax.block_until_ready(
        convlayer_forward(*args128, decode=False, mxu_dtype=jnp.float32))
    ref128 = _reference_forward(*args128, decode=False)
    assert out128.shape == (2, 16, 128)
    assert jnp.allclose(out128, ref128, atol=1e-3, rtol=1e-3), "encode f32 fused mismatch"

    # 4) production default: bf16 MXU operands + bf16 h round trip (loose check).
    out_bf16 = jax.block_until_ready(convlayer_forward(*args, decode=False, tile_l=8))
    assert out_bf16.shape == (B, L, D)
    assert bool(jnp.all(jnp.isfinite(out_bf16)))
    assert jnp.allclose(out_bf16, ref, atol=0.25), "encode bf16 mismatch"

    print("KERNEL_OK")
</pallas_src>

<mosaic_0001>
module attributes {stable_mosaic.version = 11 : i64} {
  func.func @_pass1_kernel(%arg0: i32, %arg1: i32, %arg2: memref<1x18x8xf32, #tpu.memory_space<vmem>>, %arg3: memref<3x8x8xf32, #tpu.memory_space<vmem>>, %arg4: memref<3x8x8xf32, #tpu.memory_space<vmem>>, %arg5: memref<1x8xf32, #tpu.memory_space<vmem>>, %arg6: memref<1x8xf32, #tpu.memory_space<vmem>>, %arg7: memref<1x8x8xf32, #tpu.memory_space<vmem>>, %arg8: memref<1x1x8xf32, #tpu.memory_space<vmem>>, %arg9: memref<1x1x8xf32, #tpu.memory_space<vmem>>) attributes {dimension_semantics = [#tpu.dimension_semantics<parallel>, #tpu.dimension_semantics<arbitrary>], iteration_bounds = array<i64: 2, 2>, scalar_prefetch = 0 : i64, scratch_operands = 0 : i64, tpu.core_type = #tpu.core_type<tc>, window_params = [{transform_indices = @transform_0, window_bounds = array<i64: 1, 18, 8>}, {pipeline_mode = #tpu.pipeline_mode<synchronous>, transform_indices = @transform_1, window_bounds = array<i64: 3, 8, 8>}, {pipeline_mode = #tpu.pipeline_mode<synchronous>, transform_indices = @transform_2, window_bounds = array<i64: 3, 8, 8>}, {pipeline_mode = #tpu.pipeline_mode<synchronous>, transform_indices = @transform_3, window_bounds = array<i64: 1, 8>}, {pipeline_mode = #tpu.pipeline_mode<synchronous>, transform_indices = @transform_4, window_bounds = array<i64: 1, 8>}, {transform_indices = @transform_5, window_bounds = array<i64: 1, 8, 8>}, {transform_indices = @transform_6, window_bounds = array<i64: 1, 1, 8>}, {transform_indices = @transform_7, window_bounds = array<i64: 1, 1, 8>}]} {
    %c0_i32 = arith.constant 0 : i32
    %0 = arith.cmpi eq, %arg1, %c0_i32 : i32
    %1 = arith.extui %0 : i1 to i32
    %c0_i32_0 = arith.constant 0 : i32
    %2 = arith.cmpi ne, %1, %c0_i32_0 : i32
    scf.if %2 {
      %cst_50 = arith.constant 0.000000e+00 : f32
      %73 = vector.broadcast %cst_50 : f32 to vector<1x1x8xf32>
      %c0_51 = arith.constant 0 : index
      %c0_52 = arith.constant 0 : index
      %c0_53 = arith.constant 0 : index
      %74 = vector.load %arg8[%c0_51, %c0_52, %c0_53] : memref<1x1x8xf32, #tpu.memory_space<vmem>>, vector<1x1x8xf32>
      tpu.vector_store %arg8[%c0_51, %c0_52, %c0_53], %73 {strides = array<i32>} : memref<1x1x8xf32, #tpu.memory_space<vmem>>, vector<1x1x8xf32>,
      %cst_54 = arith.constant 0.000000e+00 : f32
      %75 = vector.broadcast %cst_54 : f32 to vector<1x1x8xf32>
      %c0_55 = arith.constant 0 : index
      %c0_56 = arith.constant 0 : index
      %c0_57 = arith.constant 0 : index
      %76 = vector.load %arg9[%c0_55, %c0_56, %c0_57] : memref<1x1x8xf32, #tpu.memory_space<vmem>>, vector<1x1x8xf32>
      tpu.vector_store %arg9[%c0_55, %c0_56, %c0_57], %75 {strides = array<i32>} : memref<1x1x8xf32, #tpu.memory_space<vmem>>, vector<1x1x8xf32>,
    } else {
    }
    %c8_i32 = arith.constant 8 : i32
    %3 = arith.muli %arg1, %c8_i32 : i32
    %4 = tpu.assume_multiple %3, 8 : i32
    %c0 = arith.constant 0 : index
    %c0_1 = arith.constant 0 : index
    %5 = vector.load %arg5[%c0, %c0_1] : memref<1x8xf32, #tpu.memory_space<vmem>>, vector<1x8xf32>
    %6 = vector.shape_cast %5 : vector<1x8xf32> to vector<1x8xf32>
    %7 = vector.broadcast %6 : vector<1x8xf32> to vector<8x8xf32>
    %c0_2 = arith.constant 0 : index
    %c0_3 = arith.constant 0 : index
    %8 = vector.load %arg6[%c0_2, %c0_3] : memref<1x8xf32, #tpu.memory_space<vmem>>, vector<1x8xf32>
    %9 = vector.shape_cast %8 : vector<1x8xf32> to vector<1x8xf32>
    %10 = vector.broadcast %9 : vector<1x8xf32> to vector<8x8xf32>
    %c0_i32_4 = arith.constant 0 : i32
    %11 = arith.addi %4, %c0_i32_4 : i32
    %c0_5 = arith.constant 0 : index
    %12 = arith.index_cast %11 : i32 to index
    %c0_6 = arith.constant 0 : index
    %13 = vector.load %arg2[%c0_5, %12, %c0_6] : memref<1x18x8xf32, #tpu.memory_space<vmem>>, vector<1x8x8xf32>
    %14 = vector.shape_cast %13 : vector<1x8x8xf32> to vector<8x8xf32>
    %c0_7 = arith.constant 0 : index
    %c0_8 = arith.constant 0 : index
    %c0_9 = arith.constant 0 : index
    %15 = vector.load %arg3[%c0_7, %c0_8, %c0_9] : memref<3x8x8xf32, #tpu.memory_space<vmem>>, vector<1x8x8xf32>
    %16 = vector.shape_cast %15 : vector<1x8x8xf32> to vector<8x8xf32>
    %cst = arith.constant dense<0.000000e+00> : vector<8x8xf32>
    %17 = tpu.matmul %14, %16, %cst {dimension_numbers = #tpu.dot_dimension_numbers<[1], [0], [0], [1], [0, 0, 1, 1], [], []>} : vector<8x8xf32>, vector<8x8xf32>, vector<8x8xf32> -> vector<8x8xf32>
    %18 = arith.addf %7, %17 : vector<8x8xf32>
    %c0_10 = arith.constant 0 : index
    %c0_11 = arith.constant 0 : index
    %c0_12 = arith.constant 0 : index
    %19 = vector.load %arg4[%c0_10, %c0_11, %c0_12] : memref<3x8x8xf32, #tpu.memory_space<vmem>>, vector<1x8x8xf32>
    %20 = vector.shape_cast %19 : vector<1x8x8xf32> to vector<8x8xf32>
    %cst_13 = arith.constant dense<0.000000e+00> : vector<8x8xf32>
    %21 = tpu.matmul %14, %20, %cst_13 {dimension_numbers = #tpu.dot_dimension_numbers<[1], [0], [0], [1], [0, 0, 1, 1], [], []>} : vector<8x8xf32>, vector<8x8xf32>, vector<8x8xf32> -> vector<8x8xf32>
    %22 = arith.addf %10, %21 : vector<8x8xf32>
    %c1_i32 = arith.constant 1 : i32
    %23 = arith.addi %4, %c1_i32 : i32
    %c0_14 = arith.constant 0 : index
    %24 = arith.index_cast %23 : i32 to index
    %c0_15 = arith.constant 0 : index
    %25 = vector.load %arg2[%c0_14, %24, %c0_15] : memref<1x18x8xf32, #tpu.memory_space<vmem>>, vector<1x8x8xf32>
    %26 = vector.shape_cast %25 : vector<1x8x8xf32> to vector<8x8xf32>
    %c1 = arith.constant 1 : index
    %c0_16 = arith.constant 0 : index
    %c0_17 = arith.constant 0 : index
    %27 = vector.load %arg3[%c1, %c0_16, %c0_17] : memref<3x8x8xf32, #tpu.memory_space<vmem>>, vector<1x8x8xf32>
    %28 = vector.shape_cast %27 : vector<1x8x8xf32> to vector<8x8xf32>
    %cst_18 = arith.constant dense<0.000000e+00> : vector<8x8xf32>
    %29 = tpu.matmul %26, %28, %cst_18 {dimension_numbers = #tpu.dot_dimension_numbers<[1], [0], [0], [1], [0, 0, 1, 1], [], []>} : vector<8x8xf32>, vector<8x8xf32>, vector<8x8xf32> -> vector<8x8xf32>
    %30 = arith.addf %18, %29 : vector<8x8xf32>
    %c1_19 = arith.constant 1 : index
    %c0_20 = arith.constant 0 : index
    %c0_21 = arith.constant 0 : index
    %31 = vector.load %arg4[%c1_19, %c0_20, %c0_21] : memref<3x8x8xf32, #tpu.memory_space<vmem>>, vector<1x8x8xf32>
    %32 = vector.shape_cast %31 : vector<1x8x8xf32> to vector<8x8xf32>
    %cst_22 = arith.constant dense<0.000000e+00> : vector<8x8xf32>
    %33 = tpu.matmul %26, %32, %cst_22 {dimension_numbers = #tpu.dot_dimension_numbers<[1], [0], [0], [1], [0, 0, 1, 1], [], []>} : vector<8x8xf32>, vector<8x8xf32>, vector<8x8xf32> -> vector<8x8xf32>
    %34 = arith.addf %22, %33 : vector<8x8xf32>
    %c2_i32 = arith.constant 2 : i32
    %35 = arith.addi %4, %c2_i32 : i32
    %c0_23 = arith.constant 0 : index
    %36 = arith.index_cast %35 : i32 to index
    %c0_24 = arith.constant 0 : index
    %37 = vector.load %arg2[%c0_23, %36, %c0_24] : memref<1x18x8xf32, #tpu.memory_space<vmem>>, vector<1x8x8xf32>
    %38 = vector.shape_cast %37 : vector<1x8x8xf32> to vector<8x8xf32>
    %c2 = arith.constant 2 : index
    %c0_25 = arith.constant 0 : index
    %c0_26 = arith.constant 0 : index
    %39 = vector.load %arg3[%c2, %c0_25, %c0_26] : memref<3x8x8xf32, #tpu.memory_space<vmem>>, vector<1x8x8xf32>
    %40 = vector.shape_cast %39 : vector<1x8x8xf32> to vector<8x8xf32>
    %cst_27 = arith.constant dense<0.000000e+00> : vector<8x8xf32>
    %41 = tpu.matmul %38, %40, %cst_27 {dimension_numbers = #tpu.dot_dimension_numbers<[1], [0], [0], [1], [0, 0, 1, 1], [], []>} : vector<8x8xf32>, vector<8x8xf32>, vector<8x8xf32> -> vector<8x8xf32>
    %42 = arith.addf %30, %41 : vector<8x8xf32>
    %c2_28 = arith.constant 2 : index
    %c0_29 = arith.constant 0 : index
    %c0_30 = arith.constant 0 : index
    %43 = vector.load %arg4[%c2_28, %c0_29, %c0_30] : memref<3x8x8xf32, #tpu.memory_space<vmem>>, vector<1x8x8xf32>
    %44 = vector.shape_cast %43 : vector<1x8x8xf32> to vector<8x8xf32>
    %cst_31 = arith.constant dense<0.000000e+00> : vector<8x8xf32>
    %45 = tpu.matmul %38, %44, %cst_31 {dimension_numbers = #tpu.dot_dimension_numbers<[1], [0], [0], [1], [0, 0, 1, 1], [], []>} : vector<8x8xf32>, vector<8x8xf32>, vector<8x8xf32> -> vector<8x8xf32>
    %46 = arith.addf %34, %45 : vector<8x8xf32>
    %47 = arith.negf %46 : vector<8x8xf32>
    %48 = math.exp %47 : vector<8x8xf32>
    %cst_32 = arith.constant 1.000000e+00 : f32
    %49 = vector.broadcast %cst_32 : f32 to vector<8x8xf32>
    %50 = arith.addf %49, %48 : vector<8x8xf32>
    %51 = arith.divf %49, %50 : vector<8x8xf32>
    %52 = arith.mulf %42, %51 : vector<8x8xf32>
    %c0_33 = arith.constant 0 : index
    %c0_34 = arith.constant 0 : index
    %c0_35 = arith.constant 0 : index
    %53 = vector.load %arg7[%c0_33, %c0_34, %c0_35] : memref<1x8x8xf32, #tpu.memory_space<vmem>>, vector<1x8x8xf32>
    %54 = vector.shape_cast %53 : vector<1x8x8xf32> to vector<8x8xf32>
    %55 = vector.shape_cast %52 : vector<8x8xf32> to vector<1x8x8xf32>
    tpu.vector_store %arg7[%c0_33, %c0_34, %c0_35], %55 {strides = array<i32>} : memref<1x8x8xf32, #tpu.memory_space<vmem>>, vector<1x8x8xf32>,
    %c0_36 = arith.constant 0 : index
    %c0_37 = arith.constant 0 : index
    %c0_38 = arith.constant 0 : index
    %56 = vector.load %arg8[%c0_36, %c0_37, %c0_38] : memref<1x1x8xf32, #tpu.memory_space<vmem>>, vector<1x1x8xf32>
    %57 = vector.shape_cast %56 : vector<1x1x8xf32> to vector<1x8xf32>
    %cst_39 = arith.constant dense<0.000000e+00> : vector<8xf32>
    %58 = vector.multi_reduction <add>, %52, %cst_39 [0] : vector<8x8xf32> to vector<8xf32>
    %59 = vector.shape_cast %58 : vector<8xf32> to vector<1x8xf32>
    %60 = arith.addf %57, %59 : vector<1x8xf32>
    %c0_40 = arith.constant 0 : index
    %c0_41 = arith.constant 0 : index
    %c0_42 = arith.constant 0 : index
    %61 = vector.load %arg8[%c0_40, %c0_41, %c0_42] : memref<1x1x8xf32, #tpu.memory_space<vmem>>, vector<1x1x8xf32>
    %62 = vector.shape_cast %61 : vector<1x1x8xf32> to vector<1x8xf32>
    %63 = vector.shape_cast %60 : vector<1x8xf32> to vector<1x1x8xf32>
    tpu.vector_store %arg8[%c0_40, %c0_41, %c0_42], %63 {strides = array<i32>} : memref<1x1x8xf32, #tpu.memory_space<vmem>>, vector<1x1x8xf32>,
    %c0_43 = arith.constant 0 : index
    %c0_44 = arith.constant 0 : index
    %c0_45 = arith.constant 0 : index
    %64 = vector.load %arg9[%c0_43, %c0_44, %c0_45] : memref<1x1x8xf32, #tpu.memory_space<vmem>>, vector<1x1x8xf32>
    %65 = vector.shape_cast %64 : vector<1x1x8xf32> to vector<1x8xf32>
    %66 = arith.mulf %52, %52 : vector<8x8xf32>
    %cst_46 = arith.constant dense<0.000000e+00> : vector<8xf32>
    %67 = vector.multi_reduction <add>, %66, %cst_46 [0] : vector<8x8xf32> to vector<8xf32>
    %68 = vector.shape_cast %67 : vector<8xf32> to vector<1x8xf32>
    %69 = arith.addf %65, %68 : vector<1x8xf32>
    %c0_47 = arith.constant 0 : index
    %c0_48 = arith.constant 0 : index
    %c0_49 = arith.constant 0 : index
    %70 = vector.load %arg9[%c0_47, %c0_48, %c0_49] : memref<1x1x8xf32, #tpu.memory_space<vmem>>, vector<1x1x8xf32>
    %71 = vector.shape_cast %70 : vector<1x1x8xf32> to vector<1x8xf32>
    %72 = vector.shape_cast %69 : vector<1x8xf32> to vector<1x1x8xf32>
    tpu.vector_store %arg9[%c0_47, %c0_48, %c0_49], %72 {strides = array<i32>} : memref<1x1x8xf32, #tpu.memory_space<vmem>>, vector<1x1x8xf32>,
    return
  }
  func.func @transform_0(%arg0: i32, %arg1: i32) -> (i32, i32, i32) {
    %c0_i32 = arith.constant 0 : i32
    %c0_i32_0 = arith.constant 0 : i32
    %c0_i32_1 = arith.constant 0 : i32
    return %arg0, %c0_i32, %c0_i32_0 : i32, i32, i32
  }
  func.func @transform_1(%arg0: i32, %arg1: i32) -> (i32, i32, i32) {
    %c0_i32 = arith.constant 0 : i32
    %c0_i32_0 = arith.constant 0 : i32
    %c0_i32_1 = arith.constant 0 : i32
    %c0_i32_2 = arith.constant 0 : i32
    return %c0_i32, %c0_i32_0, %c0_i32_1 : i32, i32, i32
  }
  func.func @transform_2(%arg0: i32, %arg1: i32) -> (i32, i32, i32) {
    %c0_i32 = arith.constant 0 : i32
    %c0_i32_0 = arith.constant 0 : i32
    %c0_i32_1 = arith.constant 0 : i32
    %c0_i32_2 = arith.constant 0 : i32
    return %c0_i32, %c0_i32_0, %c0_i32_1 : i32, i32, i32
  }
  func.func @transform_3(%arg0: i32, %arg1: i32) -> (i32, i32) {
    %c0_i32 = arith.constant 0 : i32
    %c0_i32_0 = arith.constant 0 : i32
    %c0_i32_1 = arith.constant 0 : i32
    return %c0_i32, %c0_i32_0 : i32, i32
  }
  func.func @transform_4(%arg0: i32, %arg1: i32) -> (i32, i32) {
    %c0_i32 = arith.constant 0 : i32
    %c0_i32_0 = arith.constant 0 : i32
    %c0_i32_1 = arith.constant 0 : i32
    return %c0_i32, %c0_i32_0 : i32, i32
  }
  func.func @transform_5(%arg0: i32, %arg1: i32) -> (i32, i32, i32) {
    %c0_i32 = arith.constant 0 : i32
    %c0_i32_0 = arith.constant 0 : i32
    return %arg0, %arg1, %c0_i32 : i32, i32, i32
  }
  func.func @transform_6(%arg0: i32, %arg1: i32) -> (i32, i32, i32) {
    %c0_i32 = arith.constant 0 : i32
    %c0_i32_0 = arith.constant 0 : i32
    %c0_i32_1 = arith.constant 0 : i32
    return %arg0, %c0_i32, %c0_i32_0 : i32, i32, i32
  }
  func.func @transform_7(%arg0: i32, %arg1: i32) -> (i32, i32, i32) {
    %c0_i32 = arith.constant 0 : i32
    %c0_i32_0 = arith.constant 0 : i32
    %c0_i32_1 = arith.constant 0 : i32
    return %arg0, %c0_i32, %c0_i32_0 : i32, i32, i32
  }
}

</mosaic_0001>

<bundles_post_ra>
// kernel: tpu_custom_call.1
= control target key start
LH: loop header
LB: loop body
LE: loop exit
PB: predicated region body
PF: predicated region fallthrough
CT: control target
= control target key end

     0   :  { %13 = vsyncpa [#allocation3], 0  ;;  %s1556_s0 = inlined_call_operand.vmem [shape: f32[2,18,8], index: 0, kind: input, shape index: {}]   ;;  %s1557_s1 = inlined_call_operand.vmem [shape: f32[3,8,8], index: 1, kind: input, shape index: {}]   ;;  %s1558_s2 = inlined_call_operand.vmem [shape: f32[3,8,8], index: 2, kind: input, shape index: {}]   ;;  %s1559_s3 = inlined_call_operand.vmem [shape: f32[1,8], index: 3, kind: input, shape index: {}]   ;;  %s1560_s4 = inlined_call_operand.vmem [shape: f32[1,8], index: 4, kind: input, shape index: {}]   ;;  %s1561_s5 = inlined_call_operand.vmem [shape: f32[2,16,8], index: 5, kind: output, shape index: {0}]   ;;  %s1562_s6 = inlined_call_operand.hbm [shape: f32[2,1,8], index: 6, kind: output, shape index: {1}]   ;;  %s1563_s7 = inlined_call_operand.hbm [shape: f32[2,1,8], index: 7, kind: output, shape index: {2}]  }
   0x1   :  { %15 = vsyncpa [#allocation3 + $0x1], 0 }
   0x2   :  { %16 = vsyncpa [#allocation5], 0 }
   0x3   :  { %18 = vsyncpa [#allocation5 + $0x1], 0  ;;  %s1329_s24 = smov 0   ;;  %s1331_s25 = smov 0  }
   0x4   :  { %s1333_s26 = smov 0   ;;  %s1335_s27 = smov 0  }
   0x5   :  { %s1337_s28 = smov 0   ;;  %s1339_s29 = smov 0  }
   0x6   :  { %s1341_s30 = smov 0   ;;  %s1343_s8 = smov 0  }
   0x7 LB: > { %1567 = sst [smem:[#allocation8_spill]] %s1274_s29  ;;  %s1003_s9 = sadd.s32 4294967295, %s1282_s8   ;;  %s1282_s8 = sphi %s1343_s8, %s24_s8   ;;  %s1278_s30 = sphi %s1341_s30, %s1578_s30   ;;  %s1274_s29 = sphi %s1339_s29, %s1577_s29   ;;  %s1270_s28 = sphi %s1337_s28, %s1576_s28   ;;  %s1266_s27 = sphi %s1335_s27, %s1575_s27   ;;  %s1262_s26 = sphi %s1333_s26, %s1581_s26   ;;  %s1258_s25 = sphi %s1331_s25, %s1580_s25   ;;  %s1254_s24 = sphi %s1329_s24, %s1579_s24  }
   0x8   : > { %1568 = sst [smem:[#allocation9_spill]] %s1278_s30  ;;  %s1004_s10 = sadd.s32 4294967294, %s1282_s8  }
   0x9   : > { %s33_s11 = sadd.s32 1, %s1274_s29  ;;  %s36_s12 = sadd.s32 1, %s1278_s30 }
   0xa   : > { %p34_p0 = scmp.ge.s32.totalorder %s33_s11, 2  ;;  %p191_p1 = scmp.ne.s32.totalorder %s1262_s26, %s1258_s25 }
   0xb   : > { %p192_p2 = scmp.eq.s32.totalorder %s1003_s9, 3  ;;  %p197_p4 = scmp.ne.s32.totalorder %s1258_s25, %s1254_s24 }
   0xc   : > { %s1583_s11 = smov (%p34_p0, %s33_s11), 0  ;;  %s1585_s12 = smov (!%p34_p0, %s36_s12), %s1278_s30 }
   0xd   : > { %1569 = sst [smem:[#allocation10_spill]] %s1583_s11  ;;  %p1378_p3 = por %p192_p2, %p191_p1 }
   0xe   : > { %p38_p5 = scmp.ge.s32.totalorder %s1585_s12, 2  ;;  %p198_p6 = scmp.eq.s32.totalorder %s1004_s10, 3 }
   0xf   : > { %p1007_p7 = scmp.ge.s32.totalorder %s1282_s8, 1  ;;  %p262_p8 = scmp.lt.s32.totalorder %s1282_s8, 5 }
  0x10   : > { %s1587_s12 = smov (%p38_p5, %s1585_s12), 0  ;;  %p1388_p9 = por %p198_p6, %p197_p4 }
  0x11   : > { %1571 = sst [smem:[#allocation11_spill]] %s1587_s12  ;;  %p263_p10 = pnand %p1007_p7, %p262_p8 }
  0x12   : > { %s178_s15 = ssub.s32 %s1278_s30, %s1587_s12  ;;  %s181_s16 = sadd.s32 1, %s1262_s26 }
  0x13   : > { %p179_p11 = scmp.eq.s32.totalorder %s178_s15, 0  ;;  %266 = sbr.rel (%p263_p10) target bundleno = 326 (0x146), region = 40 }
  0x14   : > { %s1399_s18 = sand.u32 (!%p263_p10), 1, %s1258_s25   ;;  %p305_p12 = scmp.lt.s32.totalorder (!%p263_p10), %s1270_s28, 1 }
  0x15   : > { %s1396_s17 = scalar_select %p179_p11, %s1262_s26, %s181_s16  }
  0x16   : > { %p312_p13 = scmp.lt.s32.totalorder (!%p263_p10), %s1266_s27, 1  ;;  %s1414_s29 = scalar_lea.vmem (!%p263_p10), [#allocation2], %s1399_s18 }
  0x17   : > { %1573 = sst [smem:[#allocation12_spill]] %s1396_s17  ;;  %s1417_s17 = scalar_lea.vmem (!%p263_p10), [#allocation4], %s1399_s18 }
  0x18   : > { %s306_s19 = scalar_select %p305_p12, %s1270_s28, 1 }
  0x19   : > { %s313_s22 = scalar_select %p312_p13, %s1266_s27, 1 }
  0x1a   : > { %s1076_s20 = smul.u32 24, %s306_s19  ;;  %s1009_s21 = sshll.u32 %s306_s19, 1 }
  0x1b   : > { %s315_s15 = sadd.s32 %s1009_s21, %s313_s22  ;;  %p1011_p0 = scmp.ne.s32.totalorder %s1266_s27, 0 }
  0x1c   : > { %s309_s10 = scalar_lea.vmem %s1556_s0, %s1076_s20  ;;  %s1010_s16 = sshll.u32 %s315_s15, 3 }
  0x1d   : > { %s1411_s30 = scalar_lea.vmem %s1561_s5, %s1010_s16  ;;  %321 = sbr.rel (%p1011_p0) target bundleno = 36 (0x24), region = 44 }
  0x22   : > { %vm322_vm0 = vcmask 57344   ;;  %v1284_v0 = vmov 0.0  }
  0x23   : > { %323 = vst.msk [vmem:[%s1414_s29] sm:$0x1] %vm322_vm0, %v1284_v0  ;;  %324 = vst.msk [vmem:[%s1417_s17] sm:$0x1] %vm322_vm0, %v1284_v0 }
  0x24 PF: > { %v418_v1 = vld [vmem:[%s1558_s2] sm:$0xff]  ;;  %s1012_s11 = sshll.u32 %s1266_s27, 3  ;;  %vm343_vm1 = vcmask 64512   ;;  %v1285_v2 = vmov 0.0   ;;  %vm1286_vm2 = vmmov 0   ;;  %v1021_v3 = vld [vmem:[%s1558_s2 + $0x8] sm:$0xff] }
  0x25   : > { %1051 = vmatprep.subr.mxu1 %v1285_v2  ;;  %1053 = vmatprep.mubr.msk.f32.mxu1 %vm1286_vm2, %v1285_v2  ;;  %s340_s12 = scalar_lea.vmem %s309_s10, %s1012_s11  ;;  %v342_v5 = vld [vmem:[%s1557_s1] sm:$0xff]  ;;  %v1027_v7 = vld [vmem:[%s1558_s2 + $0x10] sm:$0xff]  ;;  %v1019_v8 = vld [vmem:[%s1557_s1 + $0x8] sm:$0xff]  ;;  %s852_s23 = sshll.u32 %s1414_s29, 4  ;;  %vm811_vm3 = vcmask 57344   ;;  %s1473_s23 = int_to_ptr.vmem [resolvable:$true] %s852_s23 }
  0x26   : > { %1052 = vmatpush3.msra.mxu1 %v418_v1  ;;  %v341_v4 = vld [vmem:[%s340_s12] sm:$0xff]  ;;  %1046 = vmatprep.subr.mxu0 %v1285_v2  ;;  %v1025_v10 = vld [vmem:[%s1557_s1 + $0x10] sm:$0xff]  ;;  %s865_s9 = sshll.u32 %s1417_s17, 4  ;;  %s833_s20 = scalar_lea.sflag [#allocation3], %s1399_s18  ;;  %s1482_s9 = int_to_ptr.vmem [resolvable:$true] %s865_s9 }
  0x27   : > { %1054 = vmatmul.mubr.msk.f32.vlgmr.msra.gmra.mxu1 %vm343_vm1, %v341_v4  ;;  %1061 = vmatprep.subr.mxu1 %v1285_v2  ;;  %v1018_v6 = vld [vmem:[%s340_s12 + $0x1] sm:$0xff]  ;;  %v1014_v12 = vld [vmem:[%s1560_s4] ss:$0 sm:$0xff]  ;;  %s1160_s11 = scalar_lea.vmem %s1473_s23, 16 }
  0x28   : > { %1062 = vmatpush3.msra.mxu1 %v1021_v3  ;;  %1063 = vmatprep.mubr.msk.f32.mxu1 %vm1286_vm2, %v1285_v2  ;;  %v1024_v9 = vld [vmem:[%s340_s12 + $0x2] sm:$0xff]  ;;  %v1013_v30 = vld [vmem:[%s1559_s3] ss:$0 sm:$0xff]  ;;  %p1161_p1 = scmp.ne.s32.totalorder %s1473_s23, %s1160_s11  ;;  %s1287_s12 = smov [#allocation2]  }
  0x29   : > { %1071 = vmatprep.subr.mxu1 %v1285_v2  ;;  %1047 = vmatpush3.msra.mxu0 %v342_v5  ;;  %s1164_s21 = sshll.u32 %s1287_s12, 4  ;;  %s1165_s21 = int_to_ptr.vmem [resolvable:$false] %s1164_s21 }
  0x2a   : > { %1048 = vmatprep.mubr.msk.f32.mxu0 %vm1286_vm2, %v1285_v2  ;;  %1056 = vmatprep.subr.mxu0 %v1285_v2  ;;  %v802_v48 = vld [vmem:[%s1414_s29] sm:$0x1]  ;;  %p1162_p2 = pnand %p1161_p1, %p1378_p3  ;;  %s1166_s22 = scalar_lea.vmem %s1165_s21, 32 }
  0x2b   : > { %1064 = vmatmul.mubr.msk.f32.vlgmr.msra.gmra.mxu1 %vm343_vm1, %v1018_v6  ;;  %1049 = vmatmul.mubr.msk.f32.vlgmr.msra.gmra.mxu0 %vm343_vm1, %v341_v4  ;;  %v813_v51 = vld [vmem:[%s1417_s17] sm:$0x1]  ;;  %p1167_p5 = scmp.lt.s32.totalorder %s1473_s23, %s1165_s21  ;;  %p1168_p6 = scmp.lt.s32.totalorder %s1166_s22, %s1160_s11 }
  0x2c   : > { %1072 = vmatpush3.msra.mxu1 %v1027_v7  ;;  %1073 = vmatprep.mubr.msk.f32.mxu1 %vm1286_vm2, %v1285_v2  ;;  %p1163_p4 = pneg %p1162_p2 }
  0x2d   : > { %1057 = vmatpush3.msra.mxu0 %v1019_v8  ;;  %1058 = vmatprep.mubr.msk.f32.mxu0 %vm1286_vm2, %v1285_v2  ;;  %p1169_p7 = por %p1168_p6, %p1167_p5 }
  0x2e   : > { %1066 = vmatprep.subr.mxu0 %v1285_v2 }
  0x2f   : > { %1074 = vmatmul.mubr.msk.f32.vlgmr.msra.gmra.mxu1 %vm343_vm1, %v1024_v9  ;;  %1059 = vmatmul.mubr.msk.f32.vlgmr.msra.gmra.mxu0 %vm343_vm1, %v1018_v6  ;;  %p1170_p8 = pnand %p1169_p7, %p1163_p4 }
  0x30   : > { %1067 = vmatpush3.msra.mxu0 %v1025_v10  ;;  %1068 = vmatprep.mubr.msk.f32.mxu0 %vm1286_vm2, %v1285_v2 }
  0x33   : > { %1069 = vmatmul.mubr.msk.f32.vlgmr.msra.gmra.mxu0 %vm343_vm1, %v1024_v9 }
  0xe7   : > { %v485_v11 = vpop.f32.mrf.mxu1 }
  0xe8   : > { %v489_v16 = vadd.f32 %v1014_v12, %v485_v11 }
  0xe9   : > { %v1055_v13 = vpop.f32.mrf.mxu1 }
  0xeb   : > { %v637_v14 = vpop.f32.mrf.mxu1  ;;  %v413_v15 = vpop.f32.mrf.mxu0 }
  0xec   : > { %v641_v19 = vadd.f32 %v637_v14, %v489_v16  ;;  %v417_v31 = vadd.f32 %v1013_v30, %v413_v15 }
  0xed   : > { %v1065_v17 = vpop.f32.mrf.mxu1  ;;  %v1050_v18 = vpop.f32.mrf.mxu0 }
  0xef   : > { %v789_v20 = vpop.f32.mrf.mxu1  ;;  %v564_v21 = vpop.f32.mrf.mxu0 }
  0xf0   : > { %v793_v22 = vadd.f32 %v789_v20, %v641_v19  ;;  %v568_v32 = vadd.f32 %v564_v21, %v417_v31 }
  0xf1   : > { %v1075_v23 = vpop.f32.mrf.mxu1  ;;  %v1060_v24 = vpop.f32.mrf.mxu0 }
  0xf2   : > { %v1029_v25 = vmul.f32 -1.442695, %v793_v22 }
  0xf3   : > { %v716_v26 = vpop.f32.mrf.mxu0 }
  0xf4   : > { %1156 = vpow2.f32 %v1029_v25  ;;  %v720_v33 = vadd.f32 %v716_v26, %v568_v32 }
  0xf5   : > { %v1070_v27 = vpop.f32.mrf.mxu0 }
 0x101   : > { %v1157_v28 = vpop.eup %1156 }
 0x102   : > { %v797_v29 = vadd.f32 1.0, %v1157_v28 }
 0x104   : > { %1158 = vrcp.f32 %v797_v29 }
 0x111   : > { %v1159_v34 = vpop.eup %1158 }
 0x112   : > { %v800_v35 = vmul.f32 %v1159_v34, %v720_v33 }
 0x114   : > { %801 = vst.msk [vmem:[%s1411_s30] sm:$0xff] %vm343_vm1, %v800_v35  ;;  %v803_v36 = vsel %vm343_vm1, %v800_v35, 0.0  ;;  %v814_v37 = vmul.f32 %v800_v35, %v800_v35  ;;  %s1030_s30 = sshll.u32 %s1270_s28, 4 }
 0x115   : > { %v804_v38 = vrot.slane %v803_v36, 4  ;;  %s1471_s15 = scalar_lea.hbm %s1562_s6, %s1030_s30  ;;  %s1480_s19 = scalar_lea.hbm %s1563_s7, %s1030_s30 }
 0x116   : > { %v815_v39 = vsel %vm343_vm1, %v814_v37, 0.0 }
 0x117   : > { %v805_v40 = vadd.f32 %v804_v38, %v803_v36  ;;  %v816_v41 = vrot.slane %v815_v39, 4 }
 0x119   : > { %v806_v42 = vrot.slane %v805_v40, 2  ;;  %v817_v43 = vadd.f32 %v816_v41, %v815_v39 }
 0x11b   : > { %v807_v44 = vadd.f32 %v806_v42, %v805_v40  ;;  %v818_v45 = vrot.slane %v817_v43, 2 }
 0x11d   : > { %v808_v46 = vrot.slane %v807_v44, 1  ;;  %v819_v47 = vadd.f32 %v818_v45, %v817_v43 }
 0x11f   : > { %v809_v49 = vadd.f32 %v808_v46, %v807_v44  ;;  %v820_v50 = vrot.slane %v819_v47, 1 }
 0x121   : > { %v810_v52 = vadd.f32 %v809_v49, %v802_v48  ;;  %v821_v53 = vadd.f32 %v820_v50, %v819_v47 }
 0x123   : > { %812 = vst.msk [vmem:[%s1414_s29] sm:$0x1] %vm811_vm3, %v810_v52  ;;  %v822_v54 = vadd.f32 %v821_v53, %v813_v51 }
 0x124   : > { %1173 = shalt.err (!%p1170_p8)
}
 0x125   : > { %s1174_s29 = scalar_lea.hbm %s1471_s15, 16  ;;  %s1178_s10 = scalar_lea.hbm %s1562_s6, 32 }
 0x126   : > { %p1175_p10 = scmp.ne.s32.totalorder %s1471_s15, %s1174_s29  ;;  %p1179_p13 = scmp.lt.s32.totalorder %s1471_s15, %s1562_s6 }
 0x127   : > { %p1180_p0 = scmp.lt.s32.totalorder %s1178_s10, %s1174_s29 }
 0x128   : > { %p1176_p11 = pnand %p1175_p10, %p1378_p3 }
 0x129   : > { %p1181_p1 = por %p1180_p0, %p1179_p13 }
 0x12a   : > { %p1177_p12 = pneg %p1176_p11 }
 0x12c   : > { %p1182_p2 = pnand %p1181_p1, %p1177_p12 }
 0x12e   : > { %1185 = shalt.err (!%p1182_p2)
}
 0x12f   : > { %1077 = dma.vmem_to_hbm [thread:$0]  (%p1378_p3), %s1473_s23, 16, %s1471_s15, %s833_s20   ;;  %823 = vst.msk [vmem:[%s1417_s17] sm:$0x1] %vm811_vm3, %v822_v54 }
 0x130   : > { %s837_s11 = scalar_lea.sflag [#allocation5], %s1399_s18  ;;  %s1186_s12 = scalar_lea.vmem %s1482_s9, 16 }
 0x131   : > { %p1187_p4 = scmp.ne.s32.totalorder %s1482_s9, %s1186_s12  ;;  %s1288_s21 = smov [#allocation4]  }
 0x132   : > { %s1190_s22 = sshll.u32 %s1288_s21, 4  ;;  %s1191_s22 = int_to_ptr.vmem [resolvable:$false] %s1190_s22 }
 0x133   : > { %p1188_p5 = pnand %p1187_p4, %p1378_p3  ;;  %s1192_s29 = scalar_lea.vmem %s1191_s22, 32 }
 0x134   : > { %p1193_p7 = scmp.lt.s32.totalorder %s1482_s9, %s1191_s22  ;;  %p1194_p8 = scmp.lt.s32.totalorder %s1192_s29, %s1186_s12 }
 0x135   : > { %p1189_p6 = pneg %p1188_p5 }
 0x136   : > { %p1195_p10 = por %p1194_p8, %p1193_p7 }
 0x138   : > { %p1196_p11 = pnand %p1195_p10, %p1189_p6 }
 0x13a   : > { %1199 = shalt.err (!%p1196_p11)
}
 0x13b   : > { %s1200_s17 = scalar_lea.hbm %s1480_s19, 16  ;;  %s1204_s15 = scalar_lea.hbm %s1563_s7, 32 }
 0x13c   : > { %p1201_p12 = scmp.ne.s32.totalorder %s1480_s19, %s1200_s17  ;;  %p1205_p1 = scmp.lt.s32.totalorder %s1480_s19, %s1563_s7 }
 0x13d   : > { %p1206_p2 = scmp.lt.s32.totalorder %s1204_s15, %s1200_s17 }
 0x13e   : > { %p1202_p13 = pnand %p1201_p12, %p1378_p3 }
 0x13f   : > { %p1207_p4 = por %p1206_p2, %p1205_p1 }
 0x140   : > { %p1203_p0 = pneg %p1202_p13 }
 0x142   : > { %p1208_p5 = pnand %p1207_p4, %p1203_p0 }
 0x144   : > { %1211 = shalt.err (!%p1208_p5)
}
 0x145   : > { %1078 = dma.vmem_to_hbm [thread:$0]  (%p1378_p3), %s1482_s9, 16, %s1480_s19, %s837_s11  }
 0x146 PF: > { %p1088_p6 = scmp.ge.s32.totalorder %s1282_s8, 2  ;;  %s888_s27 = sand.u32 1, %s1254_s24  }
 0x147   : > { %s889_s10 = scalar_lea.sflag [#allocation3], %s888_s27 }
 0x148   : > { %p1082_p7 = pnand %p1088_p6, %p1388_p9 }
 0x14a   : > { %p1083_p8 = pneg %p1082_p7 }
 0x14c   : > { %1245 = dma.done.wait (%p1083_p8), %s889_s10, 16  }
 0x14d   : > { %1247 = vsyncadd (%p1083_p8), %s889_s10, 4294967280  ;;  %s897_s28 = scalar_lea.sflag [#allocation5], %s888_s27 }
 0x14e   : > { %1249 = dma.done.wait (%p1083_p8), %s897_s28, 16  }
 0x14f   : > { %1251 = vsyncadd (%p1083_p8), %s897_s28, 4294967280  ;;  %s24_s8 = sadd.s32 1, %s1282_s8   ;;  %s1574_s13 = sld [smem:[#allocation12_spill]] }
 0x150   : > { %p21_p10 = scmp.ge.s32.totalorder %s24_s8, 6   ;;  %s1575_s27 = sld [smem:[#allocation8_spill]] }
 0x151   : > { %s1576_s28 = sld [smem:[#allocation9_spill]]  ;;  %s1579_s24 = smov %s1258_s25 }
 0x152   : > { %s1577_s29 = sld [smem:[#allocation10_spill]]  ;;  %s1580_s25 = smov %s1262_s26 }
 0x153   : > { %s1578_s30 = sld [smem:[#allocation11_spill]]  ;;  %23 = sbr.rel (!%p21_p10) target bundleno = 7 (0x7), region = 115 }
 0x155   : > { %s1581_s26 = smov %s1574_s13 }
 0x158   :  { %901 = vsyncpa [#allocation3], 1 }
 0x159   :  { %903 = vsyncpa [#allocation3 + $0x1], 1 }
 0x15a   :  { %904 = vsyncpa [#allocation5], 1 }
 0x15b   :  { %906 = vsyncpa [#allocation5 + $0x1], 1 }

</bundles_post_ra>
